<compile_context>
chip_gen: v5e
topology: v5e:2x2
jax: 0.10.0
libtpu: 0.0.40
codegen_flags: <defaults>
</compile_context>

<pallas_src>
import jax
import jax.numpy as jnp
from jax.experimental import pallas as pl
from jax.experimental.pallas import tpu as pltpu


def _round_up(a: int, b: int) -> int:
    return (a + b - 1) // b * b


def _vmem_capacity_bytes() -> int:
    # Conservative (v7x-class, 64 MiB) fallback if the query is unavailable.
    try:
        info = pltpu.get_tpu_info()
        return int(getattr(info, "vmem_capacity_bytes", 64 * 1024 * 1024))
    except Exception:
        return 64 * 1024 * 1024


def logreg_kernel(x_ref, w_ref, b_ref, o_ref):
    # x_ref: (TILE_N, F) VMEM; w_ref: (F, 1) VMEM; b_ref: (1, 1) SMEM; o_ref: (1, 1, TILE_N) VMEM.
    x = x_ref[...]                      # (TILE_N, F) streamed block
    w = w_ref[...]                      # (F, 1) resident weight column
    b = b_ref[0, 0]                     # scalar bias from SMEM
    # Mem-bound matvec on the idle MXU (wasted output columns are irrelevant when
    # HBM-bound); avoids a full-tile x*w VMEM temporary and keeps the XLU off the
    # critical slot.
    z = jnp.dot(x, w, preferred_element_type=jnp.float32)[:, 0] + b       # (TILE_N,)
    o_ref[...] = jax.nn.sigmoid(z)[None, None, :].astype(o_ref.dtype)     # lane-dense store


def log_regression_forward(x, weight, bias, *, tile_n=None):
    """x: (N, F) f32; weight: (1, F) f32 (PyTorch nn.Linear layout); bias: (1,) f32 -> (N, 1)."""
    N, F = x.shape
    x = x.astype(jnp.float32)
    # NOTE: do not cast x to bf16 here; only stream bf16 if the caller already holds x in
    # bf16 (a standalone f32->bf16 pass adds a full HBM round-trip and cancels the win).
    w_col = weight.reshape(F, 1).astype(jnp.float32)
    b = bias.reshape(1, 1).astype(jnp.float32)

    # Lane-padding-aware VMEM budget: a (tile_n, F) f32 block occupies
    # tile_n * round_up(F, 128) * 4 bytes of VMEM regardless of F.
    bytes_per_row = _round_up(F, 128) * 4
    if _vmem_capacity_bytes() > 96 * 1024 * 1024:       # v5e / v6e: 128 MiB physical VMEM
        x_block_budget = 16 * 1024 * 1024
        vmem_limit = 80 * 1024 * 1024
    else:                                               # v7x-class: 64 MiB physical VMEM
        x_block_budget = 8 * 1024 * 1024
        vmem_limit = 48 * 1024 * 1024
    # In flight: 2 double-buffered x blocks + matvec/relayout temporaries + tiny output
    # buffers -- comfortably under vmem_limit (and physical VMEM) for the budgets above.
    max_rows = max(8, (x_block_budget // bytes_per_row) // 8 * 8)

    if tile_n is None or tile_n >= N:
        tile_n = min(N, max_rows)            # whole batch in one block when it fits
    else:
        tile_n = min(tile_n, max_rows, N)
    if tile_n < N:
        # Multi-block path: enforce the (8,128) sublane rule; keep output stores
        # lane-dense (>=128 wide) whenever the batch and VMEM budget allow it.
        tile_n = max(8, tile_n // 8 * 8)
        if N >= 128 and max_rows >= 128:
            tile_n = max(tile_n, 128)

    num_tiles = pl.cdiv(N, tile_n)           # no jnp.pad: the last block is edge-clipped

    out = pl.pallas_call(
        logreg_kernel,
        out_shape=jax.ShapeDtypeStruct((num_tiles, 1, tile_n), jnp.float32),
        grid=(num_tiles,),
        in_specs=[
            pl.BlockSpec((tile_n, F), lambda i: (i, 0)),           # streamed x block
            pl.BlockSpec((F, 1), lambda i: (0, 0)),                # resident weight column
            pl.BlockSpec(memory_space=pltpu.MemorySpace.SMEM),     # scalar bias
        ],
        out_specs=pl.BlockSpec((1, 1, tile_n), lambda i: (i, 0, 0)),  # lane-dense slab
        compiler_params=pltpu.CompilerParams(
            # TODO(synk): on v7x, if a trace shows one TensorCore doing all tiles, switch
            # this axis to pltpu.CORE_PARALLEL (or an explicit core_map split) to use both
            # TCs' HBM paths.
            dimension_semantics=("parallel",),
            vmem_limit_bytes=vmem_limit,
        ),
    )(x, w_col, b)

    # Rows >= N in the last block hold sigmoid(garbage); they are sliced off here and must
    # never be fed into a reduction downstream.
    return out.reshape(num_tiles * tile_n, 1)[:N]


if __name__ == "__main__":
    key = jax.random.PRNGKey(0)
    kx, kw, kb = jax.random.split(key, 3)

    N, F = 132, 32   # batch not a multiple of 8 -> exercises the edge-clipped last block
    x = jax.random.normal(kx, (N, F), dtype=jnp.float32)

    # nn.Linear-style init: U(-1/sqrt(F), 1/sqrt(F)).
    bound = 1.0 / (F ** 0.5)
    weight = jax.random.uniform(kw, (1, F), minval=-bound, maxval=bound, dtype=jnp.float32)
    bias = jax.random.uniform(kb, (1,), minval=-bound, maxval=bound, dtype=jnp.float32)

    y_ref = jax.nn.sigmoid(x @ weight.T + bias)

    # Auto tile: single block covering the whole (small) batch.
    y = jax.block_until_ready(log_regression_forward(x, weight, bias))
    assert y.shape == (N, 1)
    assert jnp.allclose(y, y_ref, atol=1e-5, rtol=1e-5)

    # Explicit small tile: multi-block grid with a partial, edge-clipped final block.
    y2 = jax.block_until_ready(log_regression_forward(x, weight, bias, tile_n=48))
    assert y2.shape == (N, 1)
    assert jnp.allclose(y2, y_ref, atol=1e-5, rtol=1e-5)

    print("KERNEL_OK")
</pallas_src>

<mosaic_0001>
module attributes {stable_mosaic.version = 11 : i64} {
  func.func @logreg_kernel(%arg0: i32, %arg1: memref<132x32xf32, #tpu.memory_space<vmem>>, %arg2: memref<32x1xf32, #tpu.memory_space<vmem>>, %arg3: memref<1x1xf32, #tpu.memory_space<smem>>, %arg4: memref<1x1x132xf32, #tpu.memory_space<vmem>>) attributes {dimension_semantics = [#tpu.dimension_semantics<parallel>], iteration_bounds = array<i64: 1>, scalar_prefetch = 0 : i64, scratch_operands = 0 : i64, tpu.core_type = #tpu.core_type<tc>, window_params = [{transform_indices = @transform_0, window_bounds = array<i64: 132, 32>}, {pipeline_mode = #tpu.pipeline_mode<synchronous>, transform_indices = @transform_1, window_bounds = array<i64: 32, 1>}, {transform_indices = @transform_2, window_bounds = array<i64: 1, 1>}, {transform_indices = @transform_3, window_bounds = array<i64: 1, 1, 132>}]} {
    %c0 = arith.constant 0 : index
    %c0_0 = arith.constant 0 : index
    %0 = vector.load %arg1[%c0, %c0_0] : memref<132x32xf32, #tpu.memory_space<vmem>>, vector<132x32xf32>
    %c0_1 = arith.constant 0 : index
    %c0_2 = arith.constant 0 : index
    %1 = vector.load %arg2[%c0_1, %c0_2] : memref<32x1xf32, #tpu.memory_space<vmem>>, vector<32x1xf32>
    %c0_3 = arith.constant 0 : index
    %c0_4 = arith.constant 0 : index
    %2 = memref.load %arg3[%c0_3, %c0_4] : memref<1x1xf32, #tpu.memory_space<smem>>
    %cst = arith.constant dense<0.000000e+00> : vector<132x1xf32>
    %3 = tpu.matmul %0, %1, %cst {dimension_numbers = #tpu.dot_dimension_numbers<[1], [0], [0], [1], [0, 0, 1, 1], [], []>} : vector<132x32xf32>, vector<32x1xf32>, vector<132x1xf32> -> vector<132x1xf32>
    %4 = vector.shape_cast %3 : vector<132x1xf32> to vector<132xf32>
    %5 = vector.broadcast %2 : f32 to vector<132xf32>
    %6 = arith.addf %4, %5 : vector<132xf32>
    %7 = arith.negf %6 : vector<132xf32>
    %8 = math.exp %7 : vector<132xf32>
    %cst_5 = arith.constant 1.000000e+00 : f32
    %9 = vector.broadcast %cst_5 : f32 to vector<132xf32>
    %10 = arith.addf %9, %8 : vector<132xf32>
    %11 = arith.divf %9, %10 : vector<132xf32>
    %12 = vector.shape_cast %11 : vector<132xf32> to vector<1x1x132xf32>
    %c0_6 = arith.constant 0 : index
    %c0_7 = arith.constant 0 : index
    %c0_8 = arith.constant 0 : index
    %13 = vector.load %arg4[%c0_6, %c0_7, %c0_8] : memref<1x1x132xf32, #tpu.memory_space<vmem>>, vector<1x1x132xf32>
    tpu.vector_store %arg4[%c0_6, %c0_7, %c0_8], %12 {strides = array<i32>} : memref<1x1x132xf32, #tpu.memory_space<vmem>>, vector<1x1x132xf32>,
    return
  }
  func.func @transform_0(%arg0: i32) -> (i32, i32) {
    %c0_i32 = arith.constant 0 : i32
    %c0_i32_0 = arith.constant 0 : i32
    return %arg0, %c0_i32 : i32, i32
  }
  func.func @transform_1(%arg0: i32) -> (i32, i32) {
    %c0_i32 = arith.constant 0 : i32
    %c0_i32_0 = arith.constant 0 : i32
    %c0_i32_1 = arith.constant 0 : i32
    return %c0_i32, %c0_i32_0 : i32, i32
  }
  func.func @transform_2(%arg0: i32) -> (i32, i32) {
    %c0_i32 = arith.constant 0 : i32
    %c0_i32_0 = arith.constant 0 : i32
    %c0_i32_1 = arith.constant 0 : i32
    return %c0_i32, %c0_i32_0 : i32, i32
  }
  func.func @transform_3(%arg0: i32) -> (i32, i32, i32) {
    %c0_i32 = arith.constant 0 : i32
    %c0_i32_0 = arith.constant 0 : i32
    %c0_i32_1 = arith.constant 0 : i32
    return %arg0, %c0_i32, %c0_i32_0 : i32, i32, i32
  }
}

</mosaic_0001>

<bundles_post_ra>
// kernel: tpu_custom_call.1
= control target key start
LH: loop header
LB: loop body
LE: loop exit
PB: predicated region body
PF: predicated region fallthrough
CT: control target
= control target key end

     0   :  { %vm38_vm0 = vcmask 261120   ;;  %s1325_s0 = inlined_call_operand.vmem [shape: f32[132,32], index: 0, kind: input, shape index: {}]   ;;  %s1326_s1 = inlined_call_operand.vmem [shape: f32[32,1], index: 1, kind: input, shape index: {}]   ;;  %s1327_s2 = inlined_call_operand.<no memory space> [shape: f32[1,1], index: 2, kind: input, shape index: {}]   ;;  %s1328_s3 = inlined_call_operand.hbm [shape: f32[1,1,132], index: 3, kind: output, shape index: {}]  }
   0x1   :  { %v36_v0 = vld [vmem:[%s1326_s1 + $0x18] sm:$0xff]  ;;  %v35_v1 = vld [vmem:[%s1326_s1 + $0x10] sm:$0xff]  ;;  %v34_v2 = vld [vmem:[%s1326_s1 + $0x8] sm:$0xff] }
   0x2   :  { %102 = vmatpush.msra.mxu0 %v36_v0  ;;  %961 = vmatpush.msra.mxu1 %v36_v0  ;;  %v33_v3 = vld [vmem:[%s1326_s1] sm:$0xff] }
   0x3   :  { %962 = vmatpush.msra.mxu2 %v36_v0  ;;  %963 = vmatpush.msra.mxu3 %v36_v0  ;;  %v16_v4 = vld [vmem:[%s1325_s0] sm:$0xff] }
   0x4   :  { %103 = vmatpush.msra.mxu0 %v35_v1  ;;  %964 = vmatpush.msra.mxu1 %v35_v1  ;;  %v20_v5 = vld [vmem:[%s1325_s0 + $0x20] sm:$0xff] }
   0x5   :  { %965 = vmatpush.msra.mxu2 %v35_v1  ;;  %966 = vmatpush.msra.mxu3 %v35_v1 }
   0x6   :  { %104 = vmatpush.msra.mxu0 %v34_v2  ;;  %967 = vmatpush.msra.mxu1 %v34_v2 }
   0x7   :  { %9 = vsyncpa [#allocation4], 0  ;;  %968 = vmatpush.msra.mxu2 %v34_v2  ;;  %969 = vmatpush.msra.mxu3 %v34_v2  ;;  %v24_v6 = vld [vmem:[%s1325_s0 + $0x40] sm:$0xff]  ;;  %v29_v7 = vld [vmem:[%s1325_s0 + $0x68] sm:$0xff]  ;;  %v1177_v21 = vstv %s1327_s2  ;;  %s918_s29 = sshll.u32 %s1328_s3, 4  ;;  %s919_s29 = int_to_ptr.hbm [resolvable:$true] %s918_s29 }
   0x8   :  { %105 = vmatpush.msra.mxu0 %v33_v3  ;;  %970 = vmatpush.msra.mxu1 %v33_v3  ;;  %v17_v8 = vld [vmem:[%s1325_s0 + $0x8] sm:$0xff]  ;;  %v30_v11 = vld [vmem:[%s1325_s0 + $0x70] sm:$0xff]  ;;  %v31_v15 = vld [vmem:[%s1325_s0 + $0x78] sm:$0xff] }
   0x9   :  { %927 = vmatmul.msk.f32.vlgmr.msra.gmra.mxu0 %vm38_vm0, %v16_v4  ;;  %931 = vmatmul.msk.f32.vlgmr.msra.gmra.mxu1 %vm38_vm0, %v20_v5  ;;  %v21_v9 = vld [vmem:[%s1325_s0 + $0x28] sm:$0xff]  ;;  %v18_v12 = vld [vmem:[%s1325_s0 + $0x10] sm:$0xff]  ;;  %v19_v16 = vld [vmem:[%s1325_s0 + $0x18] sm:$0xff] }
   0xa   :  { %971 = vmatpush.msra.mxu2 %v33_v3  ;;  %972 = vmatpush.msra.mxu3 %v33_v3  ;;  %v25_v10 = vld [vmem:[%s1325_s0 + $0x48] sm:$0xff]  ;;  %v22_v13 = vld [vmem:[%s1325_s0 + $0x30] sm:$0xff]  ;;  %v23_v17 = vld [vmem:[%s1325_s0 + $0x38] sm:$0xff] }
   0xb   :  { %935 = vmatmul.msk.f32.vlgmr.msra.gmra.mxu2 %vm38_vm0, %v24_v6  ;;  %940 = vmatmul.msk.f32.vlgmr.msra.gmra.mxu3 %vm38_vm0, %v29_v7  ;;  %v26_v14 = vld [vmem:[%s1325_s0 + $0x50] sm:$0xff]  ;;  %v27_v18 = vld [vmem:[%s1325_s0 + $0x58] sm:$0xff]  ;;  %v32_v19 = vld [vmem:[%s1325_s0 + $0x80] sm:$0xf] }
   0xc   :  { %v28_v20 = vld [vmem:[%s1325_s0 + $0x60] sm:$0xff]  ;;  %s1073_s0 = smov [#allocation3]  }
   0xd   :  { %s916_s2 = sshll.u32 %s1073_s0, 4  ;;  %s917_s2 = int_to_ptr.vmem [resolvable:$true] %s916_s2 }
  0x11   :  { %928 = vmatmul.msk.f32.gmra.mxu0 %vm38_vm0, %v17_v8  ;;  %932 = vmatmul.msk.f32.gmra.mxu1 %vm38_vm0, %v21_v9 }
  0x13   :  { %936 = vmatmul.msk.f32.gmra.mxu2 %vm38_vm0, %v25_v10  ;;  %941 = vmatmul.msk.f32.gmra.mxu3 %vm38_vm0, %v30_v11 }
  0x19   :  { %929 = vmatmul.msk.f32.gmra.mxu0 %vm38_vm0, %v18_v12  ;;  %933 = vmatmul.msk.f32.gmra.mxu1 %vm38_vm0, %v22_v13 }
  0x1b   :  { %937 = vmatmul.msk.f32.gmra.mxu2 %vm38_vm0, %v26_v14  ;;  %942 = vmatmul.msk.f32.gmra.mxu3 %vm38_vm0, %v31_v15 }
  0x21   :  { %930 = vmatmul.msk.f32.gmra.mxu0 %vm38_vm0, %v19_v16  ;;  %934 = vmatmul.msk.f32.gmra.mxu1 %vm38_vm0, %v23_v17 }
  0x23   :  { %938 = vmatmul.msk.f32.gmra.mxu2 %vm38_vm0, %v27_v18  ;;  %943 = vmatmul.msk.f32.gmra.mxu3 %vm38_vm0, %v32_v19 }
  0x2b   :  { %939 = vmatmul.msk.f32.gmra.mxu2 %vm38_vm0, %v28_v20 }
  0x86   :  { %v107_v22 = vpop.f32.mrf.mxu0  ;;  %v119_v2 = vpop.f32.mrf.mxu1 }
  0x87   :  { %v159_v23 = vadd.f32 %v1177_v21, %v107_v22  ;;  %v163_v6 = vadd.f32 %v1177_v21, %v119_v2 }
  0x89   :  { %v944_v24 = vmul.f32 -1.442695, %v159_v23  ;;  %v948_v10 = vmul.f32 -1.442695, %v163_v6 }
  0x8b   :  { %978 = vpow2.f32 %v944_v24 }
  0x8e   :  { %v110_v25 = vpop.f32.mrf.mxu0 }
  0x8f   :  { %v160_v26 = vadd.f32 %v1177_v21, %v110_v25  ;;  %v122_v25 = vpop.f32.mrf.mxu1 }
  0x91   :  { %v979_v27 = vpop.eup %978  ;;  %v945_v28 = vmul.f32 -1.442695, %v160_v26 }
  0x92   :  { %v227_v29 = vadd.f32 1.0, %v979_v27 }
  0x93   :  { %980 = vpow2.f32 %v945_v28 }
  0x94   :  { %982 = vrcp.f32 %v227_v29  ;;  %v255_v38 = vand.u32 2147483648, %v227_v29  ;;  %v253_v41 = vand.u32 2147483647, %v227_v29  ;;  %vm249_vm2 = vweird.f32 %v227_v29 }
  0x96   :  { %v113_v30 = vpop.f32.mrf.mxu0  ;;  %v256_v47 = vor.u32 1.1754944e-38, %v255_v38  ;;  %vm254_vm4 = vcmp.eq.f32.partialorder %v253_v41, 8.507059e+37 }
  0x97   :  { %v161_v31 = vadd.f32 %v1177_v21, %v113_v30  ;;  %v164_v30 = vadd.f32 %v1177_v21, %v122_v25 }
  0x99   :  { %v981_v32 = vpop.eup %980  ;;  %v946_v33 = vmul.f32 -1.442695, %v161_v31 }
  0x9a   :  { %v983_v34 = vpop.eup %982  ;;  %v228_v35 = vadd.f32 1.0, %v981_v32 }
  0x9b   :  { %v245_v36 = vmul.f32 %v983_v34, %v227_v29  ;;  %984 = vpow2.f32 %v946_v33  ;;  %vm250_vm1 = vweird.f32 %v983_v34 }
  0x9c   :  { %986 = vrcp.f32 %v228_v35  ;;  %vm251_vm3 = vmor %vm249_vm2, %vm250_vm1  ;;  %v270_v62 = vand.u32 2147483648, %v228_v35  ;;  %vm264_vm6 = vweird.f32 %v228_v35  ;;  %v268_v1 = vand.u32 2147483647, %v228_v35 }
  0x9d   :  { %v246_v37 = vsub.f32 1.0, %v245_v36 }
  0x9e   :  { %v116_v39 = vpop.f32.mrf.mxu0  ;;  %v271_v5 = vor.u32 1.1754944e-38, %v270_v62  ;;  %vm269_vm8 = vcmp.eq.f32.partialorder %v268_v1, 8.507059e+37 }
  0x9f   :  { %v247_v40 = vmul.f32 %v983_v34, %v246_v37  ;;  %v162_v42 = vadd.f32 %v1177_v21, %v116_v39 }
  0xa1   :  { %v985_v43 = vpop.eup %984  ;;  %v248_v44 = vadd.f32 %v983_v34, %v247_v40  ;;  %v947_v45 = vmul.f32 -1.442695, %v162_v42 }
  0xa2   :  { %v987_v46 = vpop.eup %986  ;;  %v1183_v48 = vadd.f32 1.0, %v985_v43 }
  0xa3   :  { %v252_v49 = vsel %vm251_vm3, %v983_v34, %v248_v44  ;;  %v260_v50 = vmul.f32 %v987_v46, %v228_v35  ;;  %988 = vpow2.f32 %v947_v45  ;;  %vm265_vm5 = vweird.f32 %v987_v46 }
  0xa4   :  { %v257_v51 = vsel %vm254_vm4, %v256_v47, %v252_v49  ;;  %990 = vrcp.f32 %v1183_v48  ;;  %vm266_vm7 = vmor %vm264_vm6, %vm265_vm5  ;;  %v285_v23 = vand.u32 2147483648, %v1183_v48  ;;  %vm279_vm10 = vweird.f32 %v1183_v48  ;;  %v125_v49 = vpop.f32.mrf.mxu1 }
  0xa5   :  { %v516_v52 = vrot.slane %v257_v51, 1  ;;  %v517_v53 = vrot.slane %v257_v51, 2  ;;  %v518_v54 = vrot.slane %v257_v51, 3  ;;  %631 = vst [vmem:[#allocation1] ss:$9 sm:$0xff] %v257_v51  ;;  %v519_v55 = vrot.slane %v257_v51, 4 }
  0xa6   :  { %v261_v56 = vsub.f32 1.0, %v260_v50  ;;  %v520_v57 = vrot.slane %v257_v51, 5  ;;  %v521_v58 = vrot.slane %v257_v51, 6  ;;  %v522_v61 = vrot.slane %v257_v51, 7 }
  0xa7   :  { %633 = vst [vmem:[#allocation1 + $0x1] ss:$9 sm:$0xff] %v516_v52  ;;  %v283_v24 = vand.u32 2147483647, %v1183_v48  ;;  %v286_v29 = vor.u32 1.1754944e-38, %v285_v23  ;;  %v1072_v34 = vmov 0  }
  0xa8   :  { %635 = vst [vmem:[#allocation1 + $0x2] ss:$9 sm:$0xff] %v517_v53  ;;  %v262_v59 = vmul.f32 %v987_v46, %v261_v56  ;;  %975 = vset.pattern.permute.xlu0 %v1072_v34  ;;  %976 = vset.pattern.permute.xlu1 %v1072_v34  ;;  %v949_v35 = vmul.f32 -1.442695, %v164_v30 }
  0xa9   :  { %v989_v60 = vpop.eup %988  ;;  %637 = vst [vmem:[#allocation1 + $0x3] ss:$9 sm:$0xff] %v518_v54  ;;  %vm284_vm12 = vcmp.eq.f32.partialorder %v283_v24, 8.507059e+37  ;;  %977 = vset.pattern.permute.xlu2 %v1072_v34  ;;  %v165_v54 = vadd.f32 %v1177_v21, %v125_v49 }
  0xaa   :  { %v991_v63 = vpop.eup %990  ;;  %639 = vst [vmem:[#allocation1 + $0x4] ss:$9 sm:$0xff] %v519_v55  ;;  %v263_v0 = vadd.f32 %v987_v46, %v262_v59  ;;  %v1188_v7 = vadd.f32 1.0, %v989_v60 }
  0xab   :  { %641 = vst [vmem:[#allocation1 + $0x5] ss:$9 sm:$0xff] %v520_v57  ;;  %v275_v3 = vmul.f32 %v991_v63, %v1183_v48  ;;  %vm280_vm9 = vweird.f32 %v991_v63 }
  0xac   :  { %643 = vst [vmem:[#allocation1 + $0x6] ss:$9 sm:$0xff] %v521_v58  ;;  %v267_v4 = vsel %vm266_vm7, %v987_v46, %v263_v0  ;;  %992 = vrcp.f32 %v1188_v7  ;;  %vm281_vm11 = vmor %vm279_vm10, %vm280_vm9  ;;  %v300_v46 = vand.u32 2147483648, %v1188_v7  ;;  %vm294_vm14 = vweird.f32 %v1188_v7 }
  0xad   :  { %645 = vst [vmem:[#allocation1 + $0x7] ss:$9 sm:$0xff] %v522_v61  ;;  %v272_v8 = vsel %vm269_vm8, %v271_v5, %v267_v4  ;;  %v276_v9 = vsub.f32 1.0, %v275_v3  ;;  %994 = vpow2.f32 %v948_v10  ;;  %v298_v48 = vand.u32 2147483647, %v1188_v7 }
  0xae   :  { %v523_v11 = vrot.slane %v272_v8, 1  ;;  %v524_v12 = vrot.slane %v272_v8, 2  ;;  %v525_v15 = vrot.slane %v272_v8, 3  ;;  %v526_v16 = vrot.slane %v272_v8, 4 }
  0xaf   :  { %v277_v13 = vmul.f32 %v991_v63, %v276_v9  ;;  %v527_v17 = vrot.slane %v272_v8, 5  ;;  %v528_v19 = vrot.slane %v272_v8, 6  ;;  %v529_v22 = vrot.slane %v272_v8, 7 }
  0xb0   :  { %v301_v53 = vor.u32 1.1754944e-38, %v300_v46  ;;  %vm299_vm0 = vcmp.eq.f32.partialorder %v298_v48, 8.507059e+37  ;;  %v950_v58 = vmul.f32 -1.442695, %v165_v54 }
  0xb1   :  { %v278_v20 = vadd.f32 %v991_v63, %v277_v13 }
  0xb2   :  { %v1191_v18 = vpop.eup %992 }
  0xb3   :  { %v290_v26 = vmul.f32 %v1191_v18, %v1188_v7  ;;  %v995_v27 = vpop.eup %994  ;;  %v282_v28 = vsel %vm281_vm11, %v991_v63, %v278_v20  ;;  %vm295_vm13 = vweird.f32 %v1191_v18 }
  0xb4   :  { %v646_v14 = vld [vmem:[#allocation1] sm:$0xff]  ;;  %v287_v31 = vsel %vm284_vm12, %v286_v29, %v282_v28  ;;  %v1199_v32 = vadd.f32 1.0, %v995_v27  ;;  %vm296_vm15 = vmor %vm294_vm14, %vm295_vm13 }
  0xb5   :  { %647 = vst [vmem:[#allocation1] ss:$9 sm:$0xff] %v272_v8  ;;  %v291_v33 = vsub.f32 1.0, %v290_v26  ;;  %788 = vperm.xlu0 %975, %v646_v14   ;;  %v530_v36 = vrot.slane %v287_v31, 1  ;;  %v531_v37 = vrot.slane %v287_v31, 2  ;;  %v532_v40 = vrot.slane %v287_v31, 3  ;;  %v128_v8 = vpop.f32.mrf.mxu1 }
  0xb6   :  { %648 = vst [vmem:[#allocation1 + $0x1] ss:$9 sm:$0xff] %v523_v11  ;;  %996 = vrcp.f32 %v1199_v32  ;;  %v533_v41 = vrot.slane %v287_v31, 4  ;;  %v534_v42 = vrot.slane %v287_v31, 5  ;;  %v535_v43 = vrot.slane %v287_v31, 6 }
  0xb7   :  { %649 = vst [vmem:[#allocation1 + $0x2] ss:$9 sm:$0xff] %v524_v12  ;;  %v292_v38 = vmul.f32 %v1191_v18, %v291_v33  ;;  %998 = vpow2.f32 %v949_v35  ;;  %v536_v45 = vrot.slane %v287_v31, 7  ;;  %vm309_vm1 = vweird.f32 %v1199_v32 }
  0xb8   :  { %650 = vst [vmem:[#allocation1 + $0x3] ss:$9 sm:$0xff] %v525_v15  ;;  %v315_v3 = vand.u32 2147483648, %v1199_v32  ;;  %v313_v7 = vand.u32 2147483647, %v1199_v32  ;;  %v166_v12 = vadd.f32 %v1177_v21, %v128_v8 }
  0xb9   :  { %651 = vst [vmem:[#allocation1 + $0x4] ss:$9 sm:$0xff] %v526_v16  ;;  %v293_v44 = vadd.f32 %v1191_v18, %v292_v38 }
  0xba   :  { %652 = vst [vmem:[#allocation1 + $0x5] ss:$9 sm:$0xff] %v527_v17  ;;  %v316_v10 = vor.u32 1.1754944e-38, %v315_v3  ;;  %vm314_vm4 = vcmp.eq.f32.partialorder %v313_v7, 8.507059e+37  ;;  %v951_v17 = vmul.f32 -1.442695, %v166_v12 }
  0xbb   :  { %653 = vst [vmem:[#allocation1 + $0x6] ss:$9 sm:$0xff] %v528_v19  ;;  %v297_v51 = vsel %vm296_vm15, %v1191_v18, %v293_v44 }
  0xbc   :  { %654 = vst [vmem:[#allocation1 + $0x7] ss:$9 sm:$0xff] %v529_v22  ;;  %v997_v47 = vpop.eup %996  ;;  %v302_v55 = vsel %vm299_vm0, %v301_v53, %v297_v51 }
  0xbd   :  { %v999_v50 = vpop.eup %998  ;;  %v305_v52 = vmul.f32 %v997_v47, %v1199_v32  ;;  %v537_v59 = vrot.slane %v302_v55, 1  ;;  %v538_v60 = vrot.slane %v302_v55, 2  ;;  %v539_v62 = vrot.slane %v302_v55, 3 }
  0xbe   :  { %v1211_v56 = vadd.f32 1.0, %v999_v50  ;;  %v540_v0 = vrot.slane %v302_v55, 4  ;;  %v541_v1 = vrot.slane %v302_v55, 5  ;;  %vm310_vm2 = vweird.f32 %v997_v47 }
  0xbf   :  { %v306_v57 = vsub.f32 1.0, %v305_v52  ;;  %v542_v2 = vrot.slane %v302_v55, 6  ;;  %v543_v4 = vrot.slane %v302_v55, 7  ;;  %vm311_vm3 = vmor %vm309_vm1, %vm310_vm2 }
  0xc0   :  { %1000 = vrcp.f32 %v1211_v56  ;;  %vm324_vm5 = vweird.f32 %v1211_v56  ;;  %v330_v26 = vand.u32 2147483648, %v1211_v56  ;;  %v328_v30 = vand.u32 2147483647, %v1211_v56 }
  0xc1   :  { %v307_v63 = vmul.f32 %v997_v47, %v306_v57  ;;  %1002 = vpow2.f32 %v950_v58 }
  0xc2   :  { %v331_v34 = vor.u32 1.1754944e-38, %v330_v26  ;;  %vm329_vm8 = vcmp.eq.f32.partialorder %v328_v30, 8.507059e+37 }
  0xc3   :  { %v655_v39 = vld [vmem:[#allocation1] sm:$0xff]  ;;  %v308_v6 = vadd.f32 %v997_v47, %v307_v63 }
  0xc4   :  { %656 = vst [vmem:[#allocation1] ss:$9 sm:$0xff] %v287_v31  ;;  %791 = vperm.xlu0 %975, %v655_v39   ;;  %v131_v31 = vpop.f32.mrf.mxu2 }
  0xc5   :  { %657 = vst [vmem:[#allocation1 + $0x1] ss:$9 sm:$0xff] %v530_v36  ;;  %v312_v13 = vsel %vm311_vm3, %v997_v47, %v308_v6  ;;  %v167_v36 = vadd.f32 %v1177_v21, %v131_v31 }
  0xc6   :  { %658 = vst [vmem:[#allocation1 + $0x2] ss:$9 sm:$0xff] %v531_v37  ;;  %v1001_v5 = vpop.eup %1000  ;;  %v317_v15 = vsel %vm314_vm4, %v316_v10, %v312_v13 }
  0xc7   :  { %659 = vst [vmem:[#allocation1 + $0x3] ss:$9 sm:$0xff] %v532_v40  ;;  %v1003_v9 = vpop.eup %1002  ;;  %v320_v11 = vmul.f32 %v1001_v5, %v1211_v56  ;;  %v544_v18 = vrot.slane %v317_v15, 1  ;;  %v545_v20 = vrot.slane %v317_v15, 2  ;;  %v546_v23 = vrot.slane %v317_v15, 3 }
  0xc8   :  { %660 = vst [vmem:[#allocation1 + $0x4] ss:$9 sm:$0xff] %v533_v41  ;;  %v1219_v14 = vadd.f32 1.0, %v1003_v9  ;;  %v547_v24 = vrot.slane %v317_v15, 4  ;;  %vm325_vm6 = vweird.f32 %v1001_v5  ;;  %v548_v25 = vrot.slane %v317_v15, 5 }
  0xc9   :  { %661 = vst [vmem:[#allocation1 + $0x5] ss:$9 sm:$0xff] %v534_v42  ;;  %v321_v16 = vsub.f32 1.0, %v320_v11  ;;  %v549_v28 = vrot.slane %v317_v15, 6  ;;  %v550_v32 = vrot.slane %v317_v15, 7  ;;  %vm326_vm7 = vmor %vm324_vm5, %vm325_vm6 }
  0xca   :  { %662 = vst [vmem:[#allocation1 + $0x6] ss:$9 sm:$0xff] %v535_v43  ;;  %1004 = vrcp.f32 %v1219_v14  ;;  %v952_v41 = vmul.f32 -1.442695, %v167_v36  ;;  %vm339_vm9 = vweird.f32 %v1219_v14  ;;  %v345_v49 = vand.u32 2147483648, %v1219_v14 }
  0xcb   :  { %663 = vst [vmem:[#allocation1 + $0x7] ss:$9 sm:$0xff] %v536_v45  ;;  %v322_v22 = vmul.f32 %v1001_v5, %v321_v16  ;;  %1006 = vpow2.f32 %v951_v17  ;;  %v343_v53 = vand.u32 2147483647, %v1219_v14 }
  0xcc   :  { %v134_v54 = vpop.f32.mrf.mxu2  ;;  %v346_v57 = vor.u32 1.1754944e-38, %v345_v49 }
  0xcd   :  { %v323_v29 = vadd.f32 %v1001_v5, %v322_v22  ;;  %vm344_vm12 = vcmp.eq.f32.partialorder %v343_v53, 8.507059e+37 }
  0xcf   :  { %v327_v37 = vsel %vm326_vm7, %v1001_v5, %v323_v29 }
  0xd0   :  { %v1005_v27 = vpop.eup %1004  ;;  %v332_v39 = vsel %vm329_vm8, %v331_v34, %v327_v37 }
  0xd1   :  { %v1007_v33 = vpop.eup %1006  ;;  %v335_v35 = vmul.f32 %v1005_v27, %v1219_v14  ;;  %v551_v43 = vrot.slane %v332_v39, 1  ;;  %v552_v44 = vrot.slane %v332_v39, 2  ;;  %v553_v46 = vrot.slane %v332_v39, 3 }
  0xd2   :  { %v664_v61 = vld [vmem:[#allocation1] sm:$0xff]  ;;  %v1227_v38 = vadd.f32 1.0, %v1007_v33  ;;  %v554_v47 = vrot.slane %v332_v39, 4  ;;  %vm340_vm10 = vweird.f32 %v1005_v27  ;;  %v555_v48 = vrot.slane %v332_v39, 5 }
  0xd3   :  { %665 = vst [vmem:[#allocation1] ss:$9 sm:$0xff] %v302_v55  ;;  %794 = vperm.xlu1 %976, %v664_v61   ;;  %v336_v40 = vsub.f32 1.0, %v335_v35  ;;  %v556_v51 = vrot.slane %v332_v39, 6  ;;  %v557_v55 = vrot.slane %v332_v39, 7  ;;  %vm341_vm11 = vmor %vm339_vm9, %vm340_vm10 }
  0xd4   :  { %666 = vst [vmem:[#allocation1 + $0x1] ss:$9 sm:$0xff] %v537_v59  ;;  %1008 = vrcp.f32 %v1227_v38  ;;  %v168_v59 = vadd.f32 %v1177_v21, %v134_v54  ;;  %vm354_vm13 = vweird.f32 %v1227_v38  ;;  %v360_v8 = vand.u32 2147483648, %v1227_v38  ;;  %v137_v13 = vpop.f32.mrf.mxu2 }
  0xd5   :  { %667 = vst [vmem:[#allocation1 + $0x2] ss:$9 sm:$0xff] %v538_v60  ;;  %v337_v45 = vmul.f32 %v1005_v27, %v336_v40  ;;  %1010 = vpow2.f32 %v952_v41  ;;  %v358_v12 = vand.u32 2147483647, %v1227_v38 }
  0xd6   :  { %668 = vst [vmem:[#allocation1 + $0x3] ss:$9 sm:$0xff] %v539_v62  ;;  %v361_v16 = vor.u32 1.1754944e-38, %v360_v8 }
  0xd7   :  { %669 = vst [vmem:[#allocation1 + $0x4] ss:$9 sm:$0xff] %v540_v0  ;;  %v338_v52 = vadd.f32 %v1005_v27, %v337_v45  ;;  %v953_v0 = vmul.f32 -1.442695, %v168_v59  ;;  %vm359_vm0 = vcmp.eq.f32.partialorder %v358_v12, 8.507059e+37 }
  0xd8   :  { %670 = vst [vmem:[#allocation1 + $0x5] ss:$9 sm:$0xff] %v541_v1 }
  0xd9   :  { %671 = vst [vmem:[#allocation1 + $0x6] ss:$9 sm:$0xff] %v542_v2  ;;  %v342_v60 = vsel %vm341_vm11, %v1005_v27, %v338_v52 }
  0xda   :  { %672 = vst [vmem:[#allocation1 + $0x7] ss:$9 sm:$0xff] %v543_v4  ;;  %v1009_v50 = vpop.eup %1008  ;;  %v347_v62 = vsel %vm344_vm12, %v346_v57, %v342_v60 }
  0xdb   :  { %v1011_v56 = vpop.eup %1010  ;;  %v350_v58 = vmul.f32 %v1009_v50, %v1227_v38  ;;  %v558_v2 = vrot.slane %v347_v62, 1  ;;  %v559_v3 = vrot.slane %v347_v62, 2  ;;  %v560_v5 = vrot.slane %v347_v62, 3 }
  0xdc   :  { %v1235_v61 = vadd.f32 1.0, %v1011_v56  ;;  %v561_v6 = vrot.slane %v347_v62, 4  ;;  %vm355_vm14 = vweird.f32 %v1009_v50  ;;  %v562_v7 = vrot.slane %v347_v62, 5  ;;  %v140_v37 = vpop.f32.mrf.mxu2 }
  0xdd   :  { %v351_v63 = vsub.f32 1.0, %v350_v58  ;;  %v563_v10 = vrot.slane %v347_v62, 6  ;;  %v564_v14 = vrot.slane %v347_v62, 7  ;;  %vm356_vm15 = vmor %vm354_vm13, %vm355_vm14 }
  0xde   :  { %1012 = vrcp.f32 %v1235_v61  ;;  %vm369_vm1 = vweird.f32 %v1235_v61  ;;  %v373_v36 = vand.u32 2147483647, %v1235_v61 }
  0xdf   :  { %v352_v4 = vmul.f32 %v1009_v50, %v351_v63  ;;  %1014 = vpow2.f32 %v953_v0 }
  0xe0   :  { %vm374_vm4 = vcmp.eq.f32.partialorder %v373_v36, 8.507059e+37 }
  0xe1   :  { %v673_v19 = vld [vmem:[#allocation1] sm:$0xff]  ;;  %v353_v11 = vadd.f32 %v1009_v50, %v352_v4 }
  0xe2   :  { %674 = vst [vmem:[#allocation1] ss:$9 sm:$0xff] %v317_v15  ;;  %797 = vperm.xlu1 %976, %v673_v19  }
  0xe3   :  { %675 = vst [vmem:[#allocation1 + $0x1] ss:$9 sm:$0xff] %v544_v18  ;;  %v169_v18 = vadd.f32 %v1177_v21, %v137_v13  ;;  %v357_v19 = vsel %vm356_vm15, %v1009_v50, %v353_v11 }
  0xe4   :  { %676 = vst [vmem:[#allocation1 + $0x2] ss:$9 sm:$0xff] %v545_v20  ;;  %v1013_v9 = vpop.eup %1012  ;;  %v362_v22 = vsel %vm359_vm0, %v361_v16, %v357_v19  ;;  %v143_v60 = vpop.f32.mrf.mxu2 }
  0xe5   :  { %677 = vst [vmem:[#allocation1 + $0x3] ss:$9 sm:$0xff] %v546_v23  ;;  %v1015_v15 = vpop.eup %1014  ;;  %v365_v17 = vmul.f32 %v1013_v9, %v1235_v61  ;;  %v565_v26 = vrot.slane %v362_v22, 1  ;;  %v566_v27 = vrot.slane %v362_v22, 2  ;;  %v567_v29 = vrot.slane %v362_v22, 3  ;;  %v146_v19 = vpop.f32.mrf.mxu3 }
  0xe6   :  { %678 = vst [vmem:[#allocation1 + $0x4] ss:$9 sm:$0xff] %v547_v24  ;;  %v1243_v20 = vadd.f32 1.0, %v1015_v15  ;;  %v954_v24 = vmul.f32 -1.442695, %v169_v18  ;;  %v568_v30 = vrot.slane %v362_v22, 4  ;;  %vm370_vm2 = vweird.f32 %v1013_v9 }
  0xe7   :  { %679 = vst [vmem:[#allocation1 + $0x5] ss:$9 sm:$0xff] %v548_v25  ;;  %v366_v23 = vsub.f32 1.0, %v365_v17  ;;  %v569_v31 = vrot.slane %v362_v22, 5  ;;  %v570_v34 = vrot.slane %v362_v22, 6  ;;  %v571_v38 = vrot.slane %v362_v22, 7  ;;  %vm371_vm3 = vmor %vm369_vm1, %vm370_vm2 }
  0xe8   :  { %680 = vst [vmem:[#allocation1 + $0x6] ss:$9 sm:$0xff] %v549_v28  ;;  %1016 = vrcp.f32 %v1243_v20  ;;  %vm384_vm5 = vweird.f32 %v1243_v20  ;;  %v388_v59 = vand.u32 2147483647, %v1243_v20 }
  0xe9   :  { %681 = vst [vmem:[#allocation1 + $0x7] ss:$9 sm:$0xff] %v550_v32  ;;  %v367_v28 = vmul.f32 %v1013_v9, %v366_v23  ;;  %1018 = vpow2.f32 %v954_v24  ;;  %v375_v32 = vand.u32 2147483648, %v1235_v61 }
  0xea   :  { %vm389_vm8 = vcmp.eq.f32.partialorder %v388_v59, 8.507059e+37 }
  0xeb   :  { %v368_v35 = vadd.f32 %v1013_v9, %v367_v28  ;;  %v376_v40 = vor.u32 1.1754944e-38, %v375_v32 }
  0xee   :  { %v1017_v33 = vpop.eup %1016 }
  0xef   :  { %v380_v41 = vmul.f32 %v1017_v33, %v1243_v20  ;;  %vm385_vm6 = vweird.f32 %v1017_v33 }
  0xf0   :  { %v682_v42 = vld [vmem:[#allocation1] sm:$0xff]  ;;  %vm386_vm7 = vmor %vm384_vm5, %vm385_vm6 }
  0xf1   :  { %683 = vst [vmem:[#allocation1] ss:$9 sm:$0xff] %v332_v39  ;;  %800 = vperm.xlu2 %977, %v682_v42   ;;  %v1019_v39 = vpop.eup %1018  ;;  %v170_v42 = vadd.f32 %v1177_v21, %v140_v37 }
  0xf2   :  { %684 = vst [vmem:[#allocation1 + $0x1] ss:$9 sm:$0xff] %v551_v43  ;;  %v372_v43 = vsel %vm371_vm3, %v1013_v9, %v368_v35 }
  0xf3   :  { %685 = vst [vmem:[#allocation1 + $0x2] ss:$9 sm:$0xff] %v552_v44  ;;  %v1251_v44 = vadd.f32 1.0, %v1019_v39  ;;  %v377_v45 = vsel %vm374_vm4, %v376_v40, %v372_v43  ;;  %v149_v43 = vpop.f32.mrf.mxu3 }
  0xf4   :  { %686 = vst [vmem:[#allocation1 + $0x3] ss:$9 sm:$0xff] %v553_v46  ;;  %v381_v46 = vsub.f32 1.0, %v380_v41  ;;  %v572_v49 = vrot.slane %v377_v45, 1  ;;  %v573_v50 = vrot.slane %v377_v45, 2  ;;  %v574_v52 = vrot.slane %v377_v45, 3 }
  0xf5   :  { %687 = vst [vmem:[#allocation1 + $0x4] ss:$9 sm:$0xff] %v554_v47  ;;  %v955_v47 = vmul.f32 -1.442695, %v170_v42  ;;  %1020 = vrcp.f32 %v1251_v44  ;;  %v575_v53 = vrot.slane %v377_v45, 4  ;;  %v576_v54 = vrot.slane %v377_v45, 5 }
  0xf6   :  { %688 = vst [vmem:[#allocation1 + $0x5] ss:$9 sm:$0xff] %v555_v48  ;;  %v577_v57 = vrot.slane %v377_v45, 6  ;;  %v578_v61 = vrot.slane %v377_v45, 7  ;;  %vm399_vm9 = vweird.f32 %v1251_v44  ;;  %v403_v18 = vand.u32 2147483647, %v1251_v44 }
  0xf7   :  { %689 = vst [vmem:[#allocation1 + $0x6] ss:$9 sm:$0xff] %v556_v51  ;;  %v382_v51 = vmul.f32 %v1017_v33, %v381_v46  ;;  %1022 = vpow2.f32 %v955_v47 }
  0xf8   :  { %690 = vst [vmem:[#allocation1 + $0x7] ss:$9 sm:$0xff] %v557_v55  ;;  %v390_v55 = vand.u32 2147483648, %v1243_v20  ;;  %vm404_vm12 = vcmp.eq.f32.partialorder %v403_v18, 8.507059e+37 }
  0xf9   :  { %v383_v58 = vadd.f32 %v1017_v33, %v382_v51 }
  0xfa   :  { %v391_v63 = vor.u32 1.1754944e-38, %v390_v55 }
  0xfb   :  { %v1021_v56 = vpop.eup %1020 }
  0xfc   :  { %v395_v0 = vmul.f32 %v1021_v56, %v1251_v44  ;;  %vm400_vm10 = vweird.f32 %v1021_v56 }
  0xfd   :  { %vm401_vm11 = vmor %vm399_vm9, %vm400_vm10 }
  0xff   :  { %v691_v1 = vld [vmem:[#allocation1] sm:$0xff] }
 0x100   :  { %692 = vst [vmem:[#allocation1] ss:$9 sm:$0xff] %v347_v62  ;;  %803 = vperm.xlu2 %977, %v691_v1   ;;  %v1023_v62 = vpop.eup %1022  ;;  %v171_v1 = vadd.f32 %v1177_v21, %v143_v60 }
 0x101   :  { %693 = vst [vmem:[#allocation1 + $0x1] ss:$9 sm:$0xff] %v558_v2  ;;  %v387_v2 = vsel %vm386_vm7, %v1017_v33, %v383_v58 }
 0x102   :  { %694 = vst [vmem:[#allocation1 + $0x2] ss:$9 sm:$0xff] %v559_v3  ;;  %v1259_v3 = vadd.f32 1.0, %v1023_v62  ;;  %v392_v4 = vsel %vm389_vm8, %v391_v63, %v387_v2  ;;  %v152_v2 = vpop.f32.mrf.mxu3 }
 0x103   :  { %695 = vst [vmem:[#allocation1 + $0x3] ss:$9 sm:$0xff] %v560_v5  ;;  %v396_v5 = vsub.f32 1.0, %v395_v0  ;;  %v579_v8 = vrot.slane %v392_v4, 1  ;;  %v580_v9 = vrot.slane %v392_v4, 2  ;;  %v581_v11 = vrot.slane %v392_v4, 3 }
 0x104   :  { %696 = vst [vmem:[#allocation1 + $0x4] ss:$9 sm:$0xff] %v561_v6  ;;  %v956_v6 = vmul.f32 -1.442695, %v171_v1  ;;  %1024 = vrcp.f32 %v1259_v3  ;;  %v582_v12 = vrot.slane %v392_v4, 4  ;;  %v583_v13 = vrot.slane %v392_v4, 5 }
 0x105   :  { %697 = vst [vmem:[#allocation1 + $0x5] ss:$9 sm:$0xff] %v562_v7  ;;  %v584_v16 = vrot.slane %v392_v4, 6  ;;  %v585_v20 = vrot.slane %v392_v4, 7  ;;  %vm414_vm13 = vweird.f32 %v1259_v3  ;;  %v418_v42 = vand.u32 2147483647, %v1259_v3 }
 0x106   :  { %698 = vst [vmem:[#allocation1 + $0x6] ss:$9 sm:$0xff] %v563_v10  ;;  %v397_v10 = vmul.f32 %v1021_v56, %v396_v5  ;;  %1026 = vpow2.f32 %v956_v6 }
 0x107   :  { %699 = vst [vmem:[#allocation1 + $0x7] ss:$9 sm:$0xff] %v564_v14  ;;  %v405_v14 = vand.u32 2147483648, %v1251_v44  ;;  %vm419_vm0 = vcmp.eq.f32.partialorder %v418_v42, 8.507059e+37 }
 0x108   :  { %v398_v17 = vadd.f32 %v1021_v56, %v397_v10 }
 0x109   :  { %v406_v23 = vor.u32 1.1754944e-38, %v405_v14 }
 0x10a   :  { %v1025_v15 = vpop.eup %1024 }
 0x10b   :  { %v410_v24 = vmul.f32 %v1025_v15, %v1259_v3  ;;  %vm415_vm14 = vweird.f32 %v1025_v15 }
 0x10c   :  { %vm416_vm15 = vmor %vm414_vm13, %vm415_vm14 }
 0x10e   :  { %v700_v25 = vld [vmem:[#allocation1] sm:$0xff] }
 0x10f   :  { %701 = vst [vmem:[#allocation1] ss:$9 sm:$0xff] %v362_v22  ;;  %806 = vperm.xlu0 %975, %v700_v25   ;;  %v1027_v22 = vpop.eup %1026  ;;  %v172_v25 = vadd.f32 %v1177_v21, %v146_v19 }
 0x110   :  { %702 = vst [vmem:[#allocation1 + $0x1] ss:$9 sm:$0xff] %v565_v26  ;;  %v402_v26 = vsel %vm401_vm11, %v1021_v56, %v398_v17 }
 0x111   :  { %703 = vst [vmem:[#allocation1 + $0x2] ss:$9 sm:$0xff] %v566_v27  ;;  %v1267_v27 = vadd.f32 1.0, %v1027_v22  ;;  %v407_v28 = vsel %vm404_vm12, %v406_v23, %v402_v26  ;;  %v155_v26 = vpop.f32.mrf.mxu3 }
 0x112   :  { %704 = vst [vmem:[#allocation1 + $0x3] ss:$9 sm:$0xff] %v567_v29  ;;  %v411_v29 = vsub.f32 1.0, %v410_v24  ;;  %v586_v32 = vrot.slane %v407_v28, 1  ;;  %v587_v33 = vrot.slane %v407_v28, 2  ;;  %v588_v35 = vrot.slane %v407_v28, 3 }
 0x113   :  { %705 = vst [vmem:[#allocation1 + $0x4] ss:$9 sm:$0xff] %v568_v30  ;;  %v957_v30 = vmul.f32 -1.442695, %v172_v25  ;;  %1028 = vrcp.f32 %v1267_v27  ;;  %v589_v36 = vrot.slane %v407_v28, 4  ;;  %v590_v37 = vrot.slane %v407_v28, 5 }
 0x114   :  { %706 = vst [vmem:[#allocation1 + $0x5] ss:$9 sm:$0xff] %v569_v31  ;;  %v591_v40 = vrot.slane %v407_v28, 6  ;;  %v592_v44 = vrot.slane %v407_v28, 7  ;;  %vm429_vm1 = vweird.f32 %v1267_v27  ;;  %v433_v1 = vand.u32 2147483647, %v1267_v27 }
 0x115   :  { %707 = vst [vmem:[#allocation1 + $0x6] ss:$9 sm:$0xff] %v570_v34  ;;  %v412_v34 = vmul.f32 %v1025_v15, %v411_v29  ;;  %1030 = vpow2.f32 %v957_v30 }
 0x116   :  { %708 = vst [vmem:[#allocation1 + $0x7] ss:$9 sm:$0xff] %v571_v38  ;;  %v420_v38 = vand.u32 2147483648, %v1259_v3  ;;  %vm434_vm4 = vcmp.eq.f32.partialorder %v433_v1, 8.507059e+37 }
 0x117   :  { %v413_v41 = vadd.f32 %v1025_v15, %v412_v34 }
 0x118   :  { %v421_v46 = vor.u32 1.1754944e-38, %v420_v38 }
 0x119   :  { %v1029_v39 = vpop.eup %1028 }
 0x11a   :  { %v425_v47 = vmul.f32 %v1029_v39, %v1267_v27  ;;  %vm430_vm2 = vweird.f32 %v1029_v39 }
 0x11b   :  { %vm431_vm3 = vmor %vm429_vm1, %vm430_vm2 }
 0x11d   :  { %v709_v48 = vld [vmem:[#allocation1] sm:$0xff] }
 0x11e   :  { %710 = vst [vmem:[#allocation1] ss:$9 sm:$0xff] %v377_v45  ;;  %809 = vperm.xlu1 %976, %v709_v48   ;;  %v1031_v45 = vpop.eup %1030  ;;  %v173_v48 = vadd.f32 %v1177_v21, %v149_v43 }
 0x11f   :  { %711 = vst [vmem:[#allocation1 + $0x1] ss:$9 sm:$0xff] %v572_v49  ;;  %v417_v49 = vsel %vm416_vm15, %v1025_v15, %v413_v41 }
 0x120   :  { %712 = vst [vmem:[#allocation1 + $0x2] ss:$9 sm:$0xff] %v573_v50  ;;  %v1275_v50 = vadd.f32 1.0, %v1031_v45  ;;  %v422_v51 = vsel %vm419_vm0, %v421_v46, %v417_v49 }
 0x121   :  { %713 = vst [vmem:[#allocation1 + $0x3] ss:$9 sm:$0xff] %v574_v52  ;;  %v426_v52 = vsub.f32 1.0, %v425_v47  ;;  %v593_v55 = vrot.slane %v422_v51, 1  ;;  %v594_v56 = vrot.slane %v422_v51, 2  ;;  %v595_v58 = vrot.slane %v422_v51, 3 }
 0x122   :  { %714 = vst [vmem:[#allocation1 + $0x4] ss:$9 sm:$0xff] %v575_v53  ;;  %v958_v53 = vmul.f32 -1.442695, %v173_v48  ;;  %1032 = vrcp.f32 %v1275_v50  ;;  %v596_v59 = vrot.slane %v422_v51, 4  ;;  %v597_v60 = vrot.slane %v422_v51, 5 }
 0x123   :  { %715 = vst [vmem:[#allocation1 + $0x5] ss:$9 sm:$0xff] %v576_v54  ;;  %v598_v63 = vrot.slane %v422_v51, 6  ;;  %v599_v3 = vrot.slane %v422_v51, 7  ;;  %vm444_vm5 = vweird.f32 %v1275_v50  ;;  %v448_v25 = vand.u32 2147483647, %v1275_v50 }
 0x124   :  { %716 = vst [vmem:[#allocation1 + $0x6] ss:$9 sm:$0xff] %v577_v57  ;;  %v427_v57 = vmul.f32 %v1029_v39, %v426_v52  ;;  %1034 = vpow2.f32 %v958_v53 }
 0x125   :  { %717 = vst [vmem:[#allocation1 + $0x7] ss:$9 sm:$0xff] %v578_v61  ;;  %v435_v61 = vand.u32 2147483648, %v1267_v27  ;;  %vm449_vm8 = vcmp.eq.f32.partialorder %v448_v25, 8.507059e+37 }
 0x126   :  { %v428_v0 = vadd.f32 %v1029_v39, %v427_v57 }
 0x127   :  { %v436_v5 = vor.u32 1.1754944e-38, %v435_v61 }
 0x128   :  { %v1033_v62 = vpop.eup %1032 }
 0x129   :  { %v440_v6 = vmul.f32 %v1033_v62, %v1275_v50  ;;  %vm445_vm6 = vweird.f32 %v1033_v62 }
 0x12a   :  { %vm446_vm7 = vmor %vm444_vm5, %vm445_vm6  ;;  %vm843_vm5 = vcmask 130112   ;;  %vm847_vm6 = vcmask 195712  }
 0x12c   :  { %v718_v7 = vld [vmem:[#allocation1] sm:$0xff] }
 0x12d   :  { %719 = vst [vmem:[#allocation1] ss:$9 sm:$0xff] %v392_v4  ;;  %812 = vperm.xlu2 %977, %v718_v7   ;;  %v1035_v4 = vpop.eup %1034  ;;  %v174_v7 = vadd.f32 %v1177_v21, %v152_v2 }
 0x12e   :  { %720 = vst [vmem:[#allocation1 + $0x1] ss:$9 sm:$0xff] %v579_v8  ;;  %v432_v8 = vsel %vm431_vm3, %v1029_v39, %v428_v0 }
 0x12f   :  { %721 = vst [vmem:[#allocation1 + $0x2] ss:$9 sm:$0xff] %v580_v9  ;;  %v1283_v9 = vadd.f32 1.0, %v1035_v4  ;;  %v437_v10 = vsel %vm434_vm4, %v436_v5, %v432_v8 }
 0x130   :  { %722 = vst [vmem:[#allocation1 + $0x3] ss:$9 sm:$0xff] %v581_v11  ;;  %v441_v11 = vsub.f32 1.0, %v440_v6  ;;  %v600_v14 = vrot.slane %v437_v10, 1  ;;  %v601_v15 = vrot.slane %v437_v10, 2  ;;  %v602_v17 = vrot.slane %v437_v10, 3 }
 0x131   :  { %723 = vst [vmem:[#allocation1 + $0x4] ss:$9 sm:$0xff] %v582_v12  ;;  %v959_v12 = vmul.f32 -1.442695, %v174_v7  ;;  %1036 = vrcp.f32 %v1283_v9  ;;  %v603_v18 = vrot.slane %v437_v10, 4  ;;  %v604_v19 = vrot.slane %v437_v10, 5 }
 0x132   :  { %724 = vst [vmem:[#allocation1 + $0x5] ss:$9 sm:$0xff] %v583_v13  ;;  %v605_v23 = vrot.slane %v437_v10, 6  ;;  %v606_v27 = vrot.slane %v437_v10, 7  ;;  %vm459_vm9 = vweird.f32 %v1283_v9  ;;  %v465_v43 = vand.u32 2147483648, %v1283_v9 }
 0x133   :  { %725 = vst [vmem:[#allocation1 + $0x6] ss:$9 sm:$0xff] %v584_v16  ;;  %v442_v16 = vmul.f32 %v1033_v62, %v441_v11  ;;  %1038 = vpow2.f32 %v959_v12  ;;  %v463_v47 = vand.u32 2147483647, %v1283_v9 }
 0x134   :  { %726 = vst [vmem:[#allocation1 + $0x7] ss:$9 sm:$0xff] %v585_v20  ;;  %v450_v20 = vand.u32 2147483648, %v1275_v50  ;;  %v466_v50 = vor.u32 1.1754944e-38, %v465_v43 }
 0x135   :  { %v443_v24 = vadd.f32 %v1033_v62, %v442_v16  ;;  %vm464_vm12 = vcmp.eq.f32.partialorder %v463_v47, 8.507059e+37 }
 0x136   :  { %v451_v29 = vor.u32 1.1754944e-38, %v450_v20 }
 0x137   :  { %v1037_v22 = vpop.eup %1036 }
 0x138   :  { %v455_v30 = vmul.f32 %v1037_v22, %v1283_v9  ;;  %vm460_vm10 = vweird.f32 %v1037_v22 }
 0x139   :  { %vm461_vm11 = vmor %vm459_vm9, %vm460_vm10  ;;  %vm859_vm9 = vcmask 392512   ;;  %vm863_vm10 = vcmask 458112  }
 0x13b   :  { %v727_v31 = vld [vmem:[#allocation1] sm:$0xff] }
 0x13c   :  { %728 = vst [vmem:[#allocation1] ss:$9 sm:$0xff] %v407_v28  ;;  %815 = vperm.xlu0 %975, %v727_v31   ;;  %v1039_v28 = vpop.eup %1038  ;;  %v175_v31 = vadd.f32 %v1177_v21, %v155_v26 }
 0x13d   :  { %729 = vst [vmem:[#allocation1 + $0x1] ss:$9 sm:$0xff] %v586_v32  ;;  %v447_v32 = vsel %vm446_vm7, %v1033_v62, %v443_v24  ;;  %vm851_vm7 = vcmask 261312  }
 0x13e   :  { %730 = vst [vmem:[#allocation1 + $0x2] ss:$9 sm:$0xff] %v587_v33  ;;  %v1291_v33 = vadd.f32 1.0, %v1039_v28  ;;  %v452_v34 = vsel %vm449_vm8, %v451_v29, %v447_v32  ;;  %v789_v32 = vpop.permute.xlu0 %788  ;;  %vm855_vm8 = vcmask 326912  }
 0x13f   :  { %731 = vst [vmem:[#allocation1 + $0x3] ss:$9 sm:$0xff] %v588_v35  ;;  %v456_v35 = vsub.f32 1.0, %v455_v30  ;;  %v607_v38 = vrot.slane %v452_v34, 1  ;;  %v608_v39 = vrot.slane %v452_v34, 2  ;;  %v609_v41 = vrot.slane %v452_v34, 3 }
 0x140   :  { %732 = vst [vmem:[#allocation1 + $0x4] ss:$9 sm:$0xff] %v589_v36  ;;  %v960_v36 = vmul.f32 -1.442695, %v175_v31  ;;  %1040 = vrcp.f32 %v1291_v33  ;;  %v610_v42 = vrot.slane %v452_v34, 4  ;;  %v611_v21 = vrot.slane %v452_v34, 5 }
 0x141   :  { %733 = vst [vmem:[#allocation1 + $0x5] ss:$9 sm:$0xff] %v590_v37  ;;  %v612_v45 = vrot.slane %v452_v34, 6  ;;  %v613_v48 = vrot.slane %v452_v34, 7  ;;  %vm474_vm13 = vweird.f32 %v1291_v33 }
 0x142   :  { %734 = vst [vmem:[#allocation1 + $0x6] ss:$9 sm:$0xff] %v591_v40  ;;  %v457_v40 = vmul.f32 %v1037_v22, %v456_v35  ;;  %1042 = vpow2.f32 %v960_v36  ;;  %v838_v35 = vlaneseq }
 0x143   :  { %735 = vst [vmem:[#allocation1 + $0x7] ss:$9 sm:$0xff] %v592_v44 }
 0x144   :  { %v458_v46 = vadd.f32 %v1037_v22, %v457_v40 }
 0x145   :  { %v795_v31 = vpop.permute.xlu1 %794 }
 0x146   :  { %v1041_v44 = vpop.eup %1040  ;;  %v462_v52 = vsel %vm461_vm11, %v1037_v22, %v458_v46  ;;  %v792_v36 = vpop.permute.xlu0 %791  ;;  %vm867_vm11 = vcmask 523712  }
 0x147   :  { %vm475_vm14 = vweird.f32 %v1041_v44 }
 0x148   :  { %v1043_v49 = vpop.eup %1042  ;;  %vm476_vm15 = vmor %vm474_vm13, %vm475_vm14  ;;  %vm875_vm13 = vcmask 654912   ;;  %vm879_vm14 = vcmask 720512  }
 0x149   :  { %v243_v53 = vadd.f32 1.0, %v1043_v49 }
 0x14a   :  { %v736_v54 = vld [vmem:[#allocation1] sm:$0xff] }
 0x14b   :  { %737 = vst [vmem:[#allocation1] ss:$9 sm:$0xff] %v422_v51  ;;  %818 = vperm.xlu1 %976, %v736_v54   ;;  %v470_v51 = vmul.f32 %v1041_v44, %v1291_v33  ;;  %v467_v54 = vsel %vm464_vm12, %v466_v50, %v462_v52  ;;  %1044 = vrcp.f32 %v243_v53  ;;  %vm489_vm1 = vweird.f32 %v243_v53 }
 0x14c   :  { %738 = vst [vmem:[#allocation1 + $0x1] ss:$9 sm:$0xff] %v593_v55  ;;  %v614_v57 = vrot.slane %v467_v54, 1  ;;  %v617_v61 = vrot.slane %v467_v54, 4  ;;  %v618_v62 = vrot.slane %v467_v54, 5  ;;  %v619_v1 = vrot.slane %v467_v54, 6 }
 0x14d   :  { %739 = vst [vmem:[#allocation1 + $0x2] ss:$9 sm:$0xff] %v594_v56  ;;  %v471_v55 = vsub.f32 1.0, %v470_v51  ;;  %v620_v4 = vrot.slane %v467_v54, 7  ;;  %v493_v20 = vand.u32 2147483647, %v243_v53 }
 0x14e   :  { %740 = vst [vmem:[#allocation1 + $0x3] ss:$9 sm:$0xff] %v595_v58  ;;  %v615_v58 = vrot.slane %v467_v54, 2  ;;  %vm871_vm12 = vcmask 589312  }
 0x14f   :  { %741 = vst [vmem:[#allocation1 + $0x4] ss:$9 sm:$0xff] %v596_v59  ;;  %v472_v59 = vmul.f32 %v1041_v44, %v471_v55  ;;  %vm494_vm4 = vcmp.eq.f32.partialorder %v493_v20, 8.507059e+37 }
 0x150   :  { %742 = vst [vmem:[#allocation1 + $0x5] ss:$9 sm:$0xff] %v597_v60  ;;  %v616_v60 = vrot.slane %v467_v54, 3 }
 0x151   :  { %743 = vst [vmem:[#allocation1 + $0x6] ss:$9 sm:$0xff] %v598_v63  ;;  %v480_v63 = vand.u32 2147483648, %v1291_v33  ;;  %v1045_v0 = vpop.eup %1044  ;;  %v473_v2 = vadd.f32 %v1041_v44, %v472_v59 }
 0x152   :  { %744 = vst [vmem:[#allocation1 + $0x7] ss:$9 sm:$0xff] %v599_v3  ;;  %v478_v3 = vand.u32 2147483647, %v1291_v33  ;;  %v485_v6 = vmul.f32 %v1045_v0, %v243_v53  ;;  %vm490_vm2 = vweird.f32 %v1045_v0  ;;  %v801_v33 = vpop.permute.xlu2 %800 }
 0x153   :  { %v481_v5 = vor.u32 1.1754944e-38, %v480_v63  ;;  %v477_v7 = vsel %vm476_vm15, %v1041_v44, %v473_v2  ;;  %vm491_vm3 = vmor %vm489_vm1, %vm490_vm2  ;;  %vm883_vm15 = vcmask 786112   ;;  %vm891_vm1 = vcmask 917312  }
 0x154   :  { %vm479_vm0 = vcmp.eq.f32.partialorder %v478_v3, 8.507059e+37  ;;  %v486_v9 = vsub.f32 1.0, %v485_v6  ;;  %vm895_vm2 = vcmask 982912  }
 0x155   :  { %v482_v8 = vsel %vm479_vm0, %v481_v5, %v477_v7  ;;  %vm887_vm0 = vcmask 851712  }
 0x156   :  { %v622_v12 = vrot.slane %v482_v8, 2  ;;  %v625_v16 = vrot.slane %v482_v8, 5  ;;  %v627_v22 = vrot.slane %v482_v8, 7 }
 0x159   :  { %v745_v13 = vld [vmem:[#allocation1] sm:$0xff] }
 0x15a   :  { %746 = vst [vmem:[#allocation1] ss:$9 sm:$0xff] %v437_v10  ;;  %821 = vperm.xlu2 %977, %v745_v13   ;;  %v621_v10 = vrot.slane %v482_v8, 1  ;;  %v487_v13 = vmul.f32 %v1045_v0, %v486_v9 }
 0x15b   :  { %747 = vst [vmem:[#allocation1 + $0x1] ss:$9 sm:$0xff] %v600_v14  ;;  %v623_v14 = vrot.slane %v482_v8, 3 }
 0x15c   :  { %748 = vst [vmem:[#allocation1 + $0x2] ss:$9 sm:$0xff] %v601_v15  ;;  %v624_v15 = vrot.slane %v482_v8, 4 }
 0x15d   :  { %749 = vst [vmem:[#allocation1 + $0x3] ss:$9 sm:$0xff] %v602_v17  ;;  %v495_v17 = vand.u32 2147483648, %v243_v53 }
 0x15e   :  { %750 = vst [vmem:[#allocation1 + $0x4] ss:$9 sm:$0xff] %v603_v18  ;;  %v626_v18 = vrot.slane %v482_v8, 6 }
 0x15f   :  { %751 = vst [vmem:[#allocation1 + $0x5] ss:$9 sm:$0xff] %v604_v19  ;;  %v488_v19 = vadd.f32 %v1045_v0, %v487_v13 }
 0x160   :  { %752 = vst [vmem:[#allocation1 + $0x6] ss:$9 sm:$0xff] %v605_v23  ;;  %v496_v23 = vor.u32 1.1754944e-38, %v495_v17 }
 0x161   :  { %753 = vst [vmem:[#allocation1 + $0x7] ss:$9 sm:$0xff] %v606_v27  ;;  %v492_v24 = vsel %vm491_vm3, %v1045_v0, %v488_v19  ;;  %vm899_vm3 = vcmask 1048512  }
 0x162   :  { %v497_v25 = vsel %vm494_vm4, %v496_v23, %v492_v24  ;;  %vm903_vm4 = vcmask 1040384  }
 0x163   :  { %v628_v26 = vrot.slane %v497_v25, 1  ;;  %v629_v28 = vrot.slane %v497_v25, 2  ;;  %v630_v29 = vrot.slane %v497_v25, 3 }
 0x168   :  { %v754_v37 = vld [vmem:[#allocation1] sm:$0xff] }
 0x169   :  { %755 = vst [vmem:[#allocation1] ss:$9 sm:$0xff] %v452_v34  ;;  %824 = vperm.xlu0 %975, %v754_v37   ;;  %v798_v34 = vpop.permute.xlu1 %797  ;;  %v1302_v37 = vand.u32 127, %v838_v35 }
 0x16a   :  { %756 = vst [vmem:[#allocation1 + $0x1] ss:$9 sm:$0xff] %v607_v38 }
 0x16b   :  { %757 = vst [vmem:[#allocation1 + $0x2] ss:$9 sm:$0xff] %v608_v39  ;;  %v841_v38 = vadd.s32 4294967288, %v1302_v37  ;;  %v845_v39 = vadd.s32 4294967280, %v1302_v37  ;;  %v853_v47 = vadd.s32 4294967264, %v1302_v37  ;;  %v861_v50 = vadd.s32 4294967248, %v1302_v37 }
 0x16c   :  { %758 = vst [vmem:[#allocation1 + $0x3] ss:$9 sm:$0xff] %v609_v41  ;;  %v804_v41 = vpop.permute.xlu2 %803  ;;  %v857_v52 = vadd.s32 4294967256, %v1302_v37  ;;  %v865_v55 = vadd.s32 4294967240, %v1302_v37  ;;  %v869_v63 = vadd.s32 4294967232, %v1302_v37  ;;  %v877_v0 = vadd.s32 4294967216, %v1302_v37 }
 0x16d   :  { %759 = vst [vmem:[#allocation1 + $0x4] ss:$9 sm:$0xff] %v610_v42  ;;  %v849_v42 = vadd.s32 4294967272, %v1302_v37  ;;  %v846_v44 = vperm.slane %v795_v31, %v845_v39  ;;  %v885_v9 = vadd.s32 4294967200, %v1302_v37  ;;  %v897_v19 = vadd.s32 4294967176, %v1302_v37 }
 0x16e   :  { %760 = vst [vmem:[#allocation1 + $0x5] ss:$9 sm:$0xff] %v611_v21  ;;  %v842_v21 = vperm.slane %v792_v36, %v841_v38  ;;  %v893_v20 = vadd.s32 4294967184, %v1302_v37 }
 0x16f   :  { %761 = vst [vmem:[#allocation1 + $0x6] ss:$9 sm:$0xff] %v612_v45  ;;  %v840_v45 = vperm.slane %v789_v32, %v1302_v37  ;;  %v850_v46 = vperm.slane %v798_v34, %v849_v42 }
 0x170   :  { %762 = vst [vmem:[#allocation1 + $0x7] ss:$9 sm:$0xff] %v613_v48 }
 0x171   :  { %v844_v48 = vsel %vm843_vm5, %v842_v21, %v840_v45  ;;  %vm908_vm5 = vcmp.lt.s32.totalorder %v838_v35, 132 }
 0x172   :  { %v848_v49 = vsel %vm847_vm6, %v846_v44, %v844_v48 }
 0x173   :  { %v852_v53 = vsel %vm851_vm7, %v850_v46, %v848_v49 }
 0x177   :  { %v763_v56 = vld [vmem:[#allocation1] sm:$0xff] }
 0x178   :  { %764 = vst [vmem:[#allocation1] ss:$9 sm:$0xff] %v467_v54  ;;  %827 = vperm.xlu1 %976, %v763_v56   ;;  %v854_v56 = vperm.slane %v801_v33, %v853_v47 }
 0x179   :  { %765 = vst [vmem:[#allocation1 + $0x1] ss:$9 sm:$0xff] %v614_v57 }
 0x17a   :  { %766 = vst [vmem:[#allocation1 + $0x2] ss:$9 sm:$0xff] %v615_v58  ;;  %v856_v58 = vsel %vm855_vm8, %v854_v56, %v852_v53 }
 0x17b   :  { %767 = vst [vmem:[#allocation1 + $0x3] ss:$9 sm:$0xff] %v616_v60  ;;  %v858_v60 = vperm.slane %v804_v41, %v857_v52 }
 0x17c   :  { %768 = vst [vmem:[#allocation1 + $0x4] ss:$9 sm:$0xff] %v617_v61 }
 0x17d   :  { %769 = vst [vmem:[#allocation1 + $0x5] ss:$9 sm:$0xff] %v618_v62  ;;  %v873_v62 = vadd.s32 4294967224, %v1302_v37 }
 0x17e   :  { %770 = vst [vmem:[#allocation1 + $0x6] ss:$9 sm:$0xff] %v619_v1  ;;  %v860_v1 = vsel %vm859_vm9, %v858_v60, %v856_v58 }
 0x17f   :  { %771 = vst [vmem:[#allocation1 + $0x7] ss:$9 sm:$0xff] %v620_v4 }
 0x181   :  { %v807_v43 = vpop.permute.xlu0 %806 }
 0x182   :  { %v862_v59 = vperm.slane %v807_v43, %v861_v50 }
 0x184   :  { %v864_v2 = vsel %vm863_vm10, %v862_v59, %v860_v1 }
 0x186   :  { %v772_v11 = vld [vmem:[#allocation1] sm:$0xff] }
 0x187   :  { %830 = vperm.xlu2 %977, %v772_v11   ;;  %773 = vst [vmem:[#allocation1] ss:$9 sm:$0xff] %v482_v8  ;;  %v813_v54 = vpop.permute.xlu2 %812 }
 0x188   :  { %774 = vst [vmem:[#allocation1 + $0x1] ss:$9 sm:$0xff] %v621_v10  ;;  %v870_v7 = vperm.slane %v813_v54, %v869_v63  ;;  %v881_v10 = vadd.s32 4294967208, %v1302_v37 }
 0x189   :  { %775 = vst [vmem:[#allocation1 + $0x2] ss:$9 sm:$0xff] %v622_v12  ;;  %v889_v12 = vadd.s32 4294967192, %v1302_v37 }
 0x18a   :  { %776 = vst [vmem:[#allocation1 + $0x3] ss:$9 sm:$0xff] %v623_v14 }
 0x18b   :  { %777 = vst [vmem:[#allocation1 + $0x4] ss:$9 sm:$0xff] %v624_v15 }
 0x18c   :  { %778 = vst [vmem:[#allocation1 + $0x5] ss:$9 sm:$0xff] %v625_v16 }
 0x18d   :  { %779 = vst [vmem:[#allocation1 + $0x6] ss:$9 sm:$0xff] %v626_v18 }
 0x18e   :  { %780 = vst [vmem:[#allocation1 + $0x7] ss:$9 sm:$0xff] %v627_v22 }
 0x190   :  { %v810_v40 = vpop.permute.xlu1 %809 }
 0x191   :  { %v866_v61 = vperm.slane %v810_v40, %v865_v55 }
 0x193   :  { %v868_v4 = vsel %vm867_vm11, %v866_v61, %v864_v2 }
 0x194   :  { %v872_v13 = vsel %vm871_vm12, %v870_v7, %v868_v4 }
 0x195   :  { %v781_v27 = vld [vmem:[#allocation1] sm:$0xff] }
 0x196   :  { %833 = vperm.xlu1 %976, %v781_v27   ;;  %782 = vst [vmem:[#allocation1] ss:$9 sm:$0xff] %v497_v25 }
 0x197   :  { %783 = vst [vmem:[#allocation1 + $0x1] ss:$9 sm:$0xff] %v628_v26 }
 0x198   :  { %784 = vst [vmem:[#allocation1 + $0x2] ss:$9 sm:$0xff] %v629_v28 }
 0x199   :  { %785 = vst [vmem:[#allocation1 + $0x3] ss:$9 sm:$0xff] %v630_v29 }
 0x1a0   :  { %v786_v30 = vld [vmem:[#allocation1] sm:$0xff] }
 0x1a1   :  { %836 = vperm.xlu0 %975, %v786_v30  }
 0x1ae   :  { %v816_v57 = vpop.permute.xlu0 %815 }
 0x1af   :  { %v874_v6 = vperm.slane %v816_v57, %v873_v62 }
 0x1b1   :  { %v876_v14 = vsel %vm875_vm13, %v874_v6, %v872_v13 }
 0x1b4   :  { %v822_v5 = vpop.permute.xlu2 %821 }
 0x1b5   :  { %v882_v17 = vperm.slane %v822_v5, %v881_v10 }
 0x1bd   :  { %v819_v51 = vpop.permute.xlu1 %818 }
 0x1be   :  { %v878_v8 = vperm.slane %v819_v51, %v877_v0 }
 0x1c0   :  { %v880_v15 = vsel %vm879_vm14, %v878_v8, %v876_v14 }
 0x1c1   :  { %v884_v24 = vsel %vm883_vm15, %v882_v17, %v880_v15 }
 0x1db   :  { %v825_v11 = vpop.permute.xlu0 %824 }
 0x1dc   :  { %v886_v16 = vperm.slane %v825_v11, %v885_v9 }
 0x1de   :  { %v888_v25 = vsel %vm887_vm0, %v886_v16, %v884_v24 }
 0x1e1   :  { %v831_v23 = vpop.permute.xlu2 %830 }
 0x1e2   :  { %v894_v29 = vperm.slane %v831_v23, %v893_v20 }
 0x1ea   :  { %v828_v3 = vpop.permute.xlu1 %827 }
 0x1eb   :  { %v890_v18 = vperm.slane %v828_v3, %v889_v12 }
 0x1ed   :  { %v892_v26 = vsel %vm891_vm1, %v890_v18, %v888_v25 }
 0x1ee   :  { %v896_v31 = vsel %vm895_vm2, %v894_v29, %v892_v26 }
 0x208   :  { %v834_v22 = vpop.permute.xlu1 %833 }
 0x209   :  { %v898_v27 = vperm.slane %v834_v22, %v897_v19 }
 0x20b   :  { %v900_v33 = vsel %vm899_vm3, %v898_v27, %v896_v31 }
 0x213   :  { %v837_v28 = vpop.permute.xlu0 %836 }
 0x214   :  { %v901_v30 = vperm.slane %v837_v28, %v1302_v37 }
 0x216   :  { %v902_v32 = vrot.slane %v901_v30, 7 }
 0x218   :  { %v904_v34 = vsel %vm903_vm4, %v900_v33, %v902_v32 }
 0x219   :  { %910 = vst.msk [vmem:[#allocation3] sm:$0x3] %vm908_vm5, %v904_v34 }
 0x21a   :  { %921 = dma.vmem_to_hbm [thread:$0]  %s917_s2, 32, %s919_s29, [#allocation4]  }
 0x21b   :  { %1070 = dma.done.wait [#allocation4], 32  }
 0x21c   :  { %1071 = vsyncadd [#allocation4], 4294967264 }
 0x21d   :  { %926 = vsyncpa [#allocation4], 1 }

</bundles_post_ra>
